<compile_context>
chip_gen: v6e
topology: v6e:2x2x1
jax: 0.10.0
libtpu: 0.0.40
codegen_flags: <defaults>
</compile_context>

<pallas_src>
import math
import random

import numpy as np
import jax
import jax.numpy as jnp
from jax.experimental import pallas as pl
from jax.experimental.pallas import tpu as pltpu

# Older jax versions used TPUCompilerParams.
_CompilerParams = getattr(pltpu, "CompilerParams", None)
if _CompilerParams is None:  # pragma: no cover
    _CompilerParams = pltpu.TPUCompilerParams


def _build_2d_transform_matrix(flip, offset, scale, rotate, rng):
    """Faithful replica of SegmentationAugmentation._build2dTransformMatrix
    (including the quirk that `offset` lands in row 2 of the 3x3 matrix and is
    later dropped by the [:, :2] row slice), with Python's global `random`
    replaced by a seeded random.Random for determinism."""
    t = np.eye(3, dtype=np.float32)
    for i in range(2):
        if flip:
            if rng.random() > 0.5:
                t[i, i] *= -1
        if offset:
            t[2, i] = offset * (rng.random() * 2 - 1)
        if scale:
            t[i, i] *= 1.0 + scale * (rng.random() * 2 - 1)
    if rotate:
        angle = rng.random() * math.pi * 2
        s, c = math.sin(angle), math.cos(angle)
        rot = np.array([[c, -s, 0.0], [s, c, 0.0], [0.0, 0.0, 1.0]],
                       dtype=np.float32)
        t = t @ rot
    return t  # (3, 3)


def _pick_dst_tile(HW, max_td=2048, wmat_budget_bytes=8 << 20):
    """Largest multiple-of-128 divisor of HW within the wmat VMEM budget."""
    if HW <= 256:
        return HW
    cap = min(max_td, max(128, wmat_budget_bytes // (HW * 4)))
    best = None
    td = 128
    while td <= min(HW, cap):
        if HW % td == 0:
            best = td
        td += 128
    # TODO(synk): for HW with no multiple-of-128 divisor we fall back to a
    # single full-width tile (fine for small images, VMEM-heavy for huge ones).
    return best if best is not None else HW


def _make_kernel(H, W, M, NI, NL, has_noise):
    Hf, Wf = float(H), float(W)

    def kernel(theta_ref, dst_ref, srcy_ref, srcx_ref, comb_ref, *rest):
        if has_noise:
            noise_ref, out_ref = rest
        else:
            (out_ref,) = rest

        # Batch-shared affine matrix (scalar-prefetched into SMEM).
        t00 = theta_ref[0]
        t01 = theta_ref[1]
        t02 = theta_ref[2]
        t10 = theta_ref[3]
        t11 = theta_ref[4]
        t12 = theta_ref[5]

        # ---- F.affine_grid (align_corners=False) on this dst column tile ----
        x = dst_ref[0:1, :]                       # (1, TD) normalized dst x
        y = dst_ref[1:2, :]                       # (1, TD) normalized dst y
        gx = t00 * x + t01 * y + t02
        gy = t10 * x + t11 * y + t12

        # ---- grid_sample unnormalize (align_corners=False) + border clamp ----
        ix = jnp.clip(((gx + 1.0) * Wf - 1.0) * 0.5, 0.0, Wf - 1.0)   # (1, TD)
        iy = jnp.clip(((gy + 1.0) * Hf - 1.0) * 0.5, 0.0, Hf - 1.0)   # (1, TD)

        qy = srcy_ref[...]                        # (HW, 1) source row index
        qx = srcx_ref[...]                        # (HW, 1) source col index

        # Fused bilinear interpolation-weight block (HW_src, TD_dst), bf16 at
        # the MXU boundary, f32 accumulation.
        wmat = (jnp.maximum(0.0, 1.0 - jnp.abs(iy - qy)) *
                jnp.maximum(0.0, 1.0 - jnp.abs(ix - qx))).astype(jnp.bfloat16)

        res = jnp.dot(comb_ref[...], wmat,
                      preferred_element_type=jnp.float32)           # (M, TD)

        if has_noise:
            res = res + noise_ref[...]            # zeros on label / pad rows

        # Threshold label rows in place; single lane-dense store of the slab.
        rows = jax.lax.broadcasted_iota(jnp.int32, (M, 1), 0)
        is_label = jnp.logical_and(rows >= NI, rows < NI + NL)
        out_ref[...] = jnp.where(is_label,
                                 jnp.where(res > 0.5, 1.0, 0.0),
                                 res)

    return kernel


def segmentation_augmentation(input_g, label_g, theta2x3, *, noise=None,
                              noise_key=None):
    """input_g: (N, C, H, W) float; label_g: (N, CL, H, W) bool/float;
    theta2x3: (2, 3) affine matrix shared across the batch (the module's
    transform_t.expand(N, -1, -1)[:, :2]); noise: optional std of additive
    Gaussian noise applied to the image channels only."""
    N, C, H, W = input_g.shape
    CL = label_g.shape[1]
    HW = H * W
    NI = N * C                       # stacked image rows
    NL = N * CL                      # stacked label rows
    M = ((NI + NL + 7) // 8) * 8     # pad stacked rows to a sublane multiple

    TD = _pick_dst_tile(HW)          # destination-column tile (lane-dense)
    D = max(1, HW // TD)

    # Stacked source rows: [images | labels | zero pad], streamed as bf16.
    img_rows = input_g.reshape(NI, HW).astype(jnp.float32)
    lab_rows = label_g.reshape(NL, HW).astype(jnp.float32)
    comb = jnp.concatenate([img_rows, lab_rows], axis=0)
    if M > NI + NL:
        comb = jnp.concatenate(
            [comb, jnp.zeros((M - NI - NL, HW), jnp.float32)], axis=0)
    comb = comb.astype(jnp.bfloat16)

    # Theta-independent coordinates, precomputed exactly on the host/XLA side.
    jj, ii = jnp.meshgrid(jnp.arange(H, dtype=jnp.float32),
                          jnp.arange(W, dtype=jnp.float32), indexing="ij")
    x_n = (2.0 * ii + 1.0) / W - 1.0          # normalized dst x (width)
    y_n = (2.0 * jj + 1.0) / H - 1.0          # normalized dst y (height)
    dst_xy = jnp.stack([x_n.reshape(HW), y_n.reshape(HW)], axis=0)   # (2, HW)
    src_y = jj.reshape(HW, 1)                 # (HW, 1) source row (height) idx
    src_x = ii.reshape(HW, 1)                 # (HW, 1) source col (width) idx

    theta_flat = jnp.asarray(theta2x3, jnp.float32).reshape(6)

    has_noise = noise is not None
    kernel = _make_kernel(H, W, M, NI, NL, has_noise)

    in_specs = [
        pl.BlockSpec((2, TD), lambda d, th: (0, d)),    # dst coords (per tile)
        pl.BlockSpec((HW, 1), lambda d, th: (0, 0)),    # src y (resident)
        pl.BlockSpec((HW, 1), lambda d, th: (0, 0)),    # src x (resident)
        pl.BlockSpec((M, HW), lambda d, th: (0, 0)),    # stacked rows (resident)
    ]
    call_args = [theta_flat, dst_xy, src_y, src_x, comb]

    if has_noise:
        if noise_key is None:
            noise_key = jax.random.PRNGKey(0)
        noise_rows = (jax.random.normal(noise_key, (NI, HW), jnp.float32)
                      * jnp.float32(noise))
        noise_full = jnp.zeros((M, HW), jnp.float32).at[:NI].set(noise_rows)
        in_specs.append(pl.BlockSpec((M, TD), lambda d, th: (0, d)))
        call_args.append(noise_full)

    out_spec = pl.BlockSpec((M, TD), lambda d, th: (0, d))

    # Rough per-step VMEM need (double-buffered I/O + fused wmat intermediates).
    vmem_est = (2 * M * HW * 2                       # comb (bf16), resident
                + (4 if has_noise else 2) * M * TD * 4
                + 4 * HW * TD * 4                    # wmat + fused temporaries
                + 4 * HW * 128 * 4                   # padded (HW,1) coord bufs
                + 4 * 2 * max(TD, 128) * 4)
    vmem_limit = int(min(max(2 * vmem_est, 32 * 1024 * 1024),
                         64 * 1024 * 1024))

    out = pl.pallas_call(
        kernel,
        out_shape=jax.ShapeDtypeStruct((M, HW), jnp.float32),
        grid_spec=pltpu.PrefetchScalarGridSpec(
            num_scalar_prefetch=1,                   # theta (6,) -> SMEM
            grid=(D,),
            in_specs=in_specs,
            out_specs=out_spec,
        ),
        compiler_params=_CompilerParams(
            dimension_semantics=("parallel",),       # dst tiles are independent
            vmem_limit_bytes=vmem_limit,
        ),
    )(*call_args)

    aug_input = out[:NI].reshape(N, C, H, W)
    aug_label = (out[NI:NI + NL] > 0.5).reshape(N, CL, H, W)
    return aug_input, aug_label


if __name__ == "__main__":
    key = jax.random.PRNGKey(0)
    k1, k2, k3 = jax.random.split(key, 3)
    N, C, H, W = 2, 4, 16, 16
    input_g = jax.random.normal(k1, (N, C, H, W), dtype=jnp.float32)
    label_g = jax.random.uniform(k2, (N, 1, H, W)) > 0.5     # bool mask labels

    # Deterministic augmentation config (mirrors module __init__ args).
    flip, offset, scale, rotate, noise = True, 0.1, 0.2, True, 0.05
    rng = random.Random(0)
    t3 = _build_2d_transform_matrix(flip, offset, scale, rotate, rng)
    theta = t3[:2]   # transform_t.expand(N,-1,-1)[:, :2] is batch-shared (2,3)

    aug_in, aug_lab = segmentation_augmentation(
        input_g, label_g, theta, noise=noise, noise_key=k3)
    jax.block_until_ready((aug_in, aug_lab))

    assert aug_in.shape == (N, C, H, W) and aug_in.dtype == jnp.float32
    assert aug_lab.shape == (N, 1, H, W) and aug_lab.dtype == jnp.bool_
    print("KERNEL_OK")
</pallas_src>

<mosaic_0001>
module attributes {stable_mosaic.version = 11 : i64} {
  func.func @kernel(%arg0: i32, %arg1: memref<6xf32, #tpu.memory_space<smem>>, %arg2: memref<2x256xf32, #tpu.memory_space<vmem>>, %arg3: memref<256x1xf32, #tpu.memory_space<vmem>>, %arg4: memref<256x1xf32, #tpu.memory_space<vmem>>, %arg5: memref<16x256xbf16, #tpu.memory_space<vmem>>, %arg6: memref<16x256xf32, #tpu.memory_space<vmem>>, %arg7: memref<16x256xf32, #tpu.memory_space<vmem>>) attributes {dimension_semantics = [#tpu.dimension_semantics<parallel>], iteration_bounds = array<i64: 1>, scalar_prefetch = 1 : i64, scratch_operands = 0 : i64, tpu.core_type = #tpu.core_type<tc>, window_params = [{transform_indices = @transform_0, window_bounds = array<i64: 2, 256>}, {pipeline_mode = #tpu.pipeline_mode<synchronous>, transform_indices = @transform_1, window_bounds = array<i64: 256, 1>}, {pipeline_mode = #tpu.pipeline_mode<synchronous>, transform_indices = @transform_2, window_bounds = array<i64: 256, 1>}, {pipeline_mode = #tpu.pipeline_mode<synchronous>, transform_indices = @transform_3, window_bounds = array<i64: 16, 256>}, {transform_indices = @transform_4, window_bounds = array<i64: 16, 256>}, {transform_indices = @transform_5, window_bounds = array<i64: 16, 256>}]} {
    %c0 = arith.constant 0 : index
    %0 = memref.load %arg1[%c0] : memref<6xf32, #tpu.memory_space<smem>>
    %c1 = arith.constant 1 : index
    %1 = memref.load %arg1[%c1] : memref<6xf32, #tpu.memory_space<smem>>
    %c2 = arith.constant 2 : index
    %2 = memref.load %arg1[%c2] : memref<6xf32, #tpu.memory_space<smem>>
    %c3 = arith.constant 3 : index
    %3 = memref.load %arg1[%c3] : memref<6xf32, #tpu.memory_space<smem>>
    %c4 = arith.constant 4 : index
    %4 = memref.load %arg1[%c4] : memref<6xf32, #tpu.memory_space<smem>>
    %c5 = arith.constant 5 : index
    %5 = memref.load %arg1[%c5] : memref<6xf32, #tpu.memory_space<smem>>
    %c0_0 = arith.constant 0 : index
    %c0_1 = arith.constant 0 : index
    %6 = vector.load %arg2[%c0_0, %c0_1] : memref<2x256xf32, #tpu.memory_space<vmem>>, vector<1x256xf32>
    %c1_2 = arith.constant 1 : index
    %c0_3 = arith.constant 0 : index
    %7 = vector.load %arg2[%c1_2, %c0_3] : memref<2x256xf32, #tpu.memory_space<vmem>>, vector<1x256xf32>
    %8 = vector.broadcast %0 : f32 to vector<1x256xf32>
    %9 = arith.mulf %8, %6 : vector<1x256xf32>
    %10 = vector.broadcast %1 : f32 to vector<1x256xf32>
    %11 = arith.mulf %10, %7 : vector<1x256xf32>
    %12 = arith.addf %9, %11 : vector<1x256xf32>
    %13 = vector.broadcast %2 : f32 to vector<1x256xf32>
    %14 = arith.addf %12, %13 : vector<1x256xf32>
    %15 = vector.broadcast %3 : f32 to vector<1x256xf32>
    %16 = arith.mulf %15, %6 : vector<1x256xf32>
    %17 = vector.broadcast %4 : f32 to vector<1x256xf32>
    %18 = arith.mulf %17, %7 : vector<1x256xf32>
    %19 = arith.addf %16, %18 : vector<1x256xf32>
    %20 = vector.broadcast %5 : f32 to vector<1x256xf32>
    %21 = arith.addf %19, %20 : vector<1x256xf32>
    %cst = arith.constant 1.000000e+00 : f32
    %22 = vector.broadcast %cst : f32 to vector<1x256xf32>
    %23 = arith.addf %14, %22 : vector<1x256xf32>
    %cst_4 = arith.constant 1.600000e+01 : f32
    %24 = vector.broadcast %cst_4 : f32 to vector<1x256xf32>
    %25 = arith.mulf %23, %24 : vector<1x256xf32>
    %cst_5 = arith.constant 1.000000e+00 : f32
    %26 = vector.broadcast %cst_5 : f32 to vector<1x256xf32>
    %27 = arith.subf %25, %26 : vector<1x256xf32>
    %cst_6 = arith.constant 5.000000e-01 : f32
    %28 = vector.broadcast %cst_6 : f32 to vector<1x256xf32>
    %29 = arith.mulf %27, %28 : vector<1x256xf32>
    %cst_7 = arith.constant 0.000000e+00 : f32
    %cst_8 = arith.constant 1.500000e+01 : f32
    %30 = vector.broadcast %cst_7 : f32 to vector<1x256xf32>
    %31 = arith.maximumf %30, %29 : vector<1x256xf32>
    %32 = vector.broadcast %cst_8 : f32 to vector<1x256xf32>
    %33 = arith.minimumf %32, %31 : vector<1x256xf32>
    %cst_9 = arith.constant 1.000000e+00 : f32
    %34 = vector.broadcast %cst_9 : f32 to vector<1x256xf32>
    %35 = arith.addf %21, %34 : vector<1x256xf32>
    %cst_10 = arith.constant 1.600000e+01 : f32
    %36 = vector.broadcast %cst_10 : f32 to vector<1x256xf32>
    %37 = arith.mulf %35, %36 : vector<1x256xf32>
    %cst_11 = arith.constant 1.000000e+00 : f32
    %38 = vector.broadcast %cst_11 : f32 to vector<1x256xf32>
    %39 = arith.subf %37, %38 : vector<1x256xf32>
    %cst_12 = arith.constant 5.000000e-01 : f32
    %40 = vector.broadcast %cst_12 : f32 to vector<1x256xf32>
    %41 = arith.mulf %39, %40 : vector<1x256xf32>
    %cst_13 = arith.constant 0.000000e+00 : f32
    %cst_14 = arith.constant 1.500000e+01 : f32
    %42 = vector.broadcast %cst_13 : f32 to vector<1x256xf32>
    %43 = arith.maximumf %42, %41 : vector<1x256xf32>
    %44 = vector.broadcast %cst_14 : f32 to vector<1x256xf32>
    %45 = arith.minimumf %44, %43 : vector<1x256xf32>
    %c0_15 = arith.constant 0 : index
    %c0_16 = arith.constant 0 : index
    %46 = vector.load %arg3[%c0_15, %c0_16] : memref<256x1xf32, #tpu.memory_space<vmem>>, vector<256x1xf32>
    %c0_17 = arith.constant 0 : index
    %c0_18 = arith.constant 0 : index
    %47 = vector.load %arg4[%c0_17, %c0_18] : memref<256x1xf32, #tpu.memory_space<vmem>>, vector<256x1xf32>
    %48 = vector.broadcast %45 : vector<1x256xf32> to vector<256x256xf32>
    %49 = vector.broadcast %46 : vector<256x1xf32> to vector<256x256xf32>
    %50 = arith.subf %48, %49 : vector<256x256xf32>
    %51 = math.absf %50 : vector<256x256xf32>
    %cst_19 = arith.constant 1.000000e+00 : f32
    %52 = vector.broadcast %cst_19 : f32 to vector<256x256xf32>
    %53 = arith.subf %52, %51 : vector<256x256xf32>
    %cst_20 = arith.constant 0.000000e+00 : f32
    %54 = vector.broadcast %cst_20 : f32 to vector<256x256xf32>
    %55 = arith.maximumf %54, %53 : vector<256x256xf32>
    %56 = vector.broadcast %33 : vector<1x256xf32> to vector<256x256xf32>
    %57 = vector.broadcast %47 : vector<256x1xf32> to vector<256x256xf32>
    %58 = arith.subf %56, %57 : vector<256x256xf32>
    %59 = math.absf %58 : vector<256x256xf32>
    %cst_21 = arith.constant 1.000000e+00 : f32
    %60 = vector.broadcast %cst_21 : f32 to vector<256x256xf32>
    %61 = arith.subf %60, %59 : vector<256x256xf32>
    %cst_22 = arith.constant 0.000000e+00 : f32
    %62 = vector.broadcast %cst_22 : f32 to vector<256x256xf32>
    %63 = arith.maximumf %62, %61 : vector<256x256xf32>
    %64 = arith.mulf %55, %63 : vector<256x256xf32>
    %65 = arith.truncf %64 : vector<256x256xf32> to vector<256x256xbf16>
    %c0_23 = arith.constant 0 : index
    %c0_24 = arith.constant 0 : index
    %66 = vector.load %arg5[%c0_23, %c0_24] : memref<16x256xbf16, #tpu.memory_space<vmem>>, vector<16x256xbf16>
    %cst_25 = arith.constant dense<0.000000e+00> : vector<16x256xf32>
    %67 = tpu.matmul %66, %65, %cst_25 {dimension_numbers = #tpu.dot_dimension_numbers<[1], [0], [0], [1], [0, 0, 1, 1], [], []>} : vector<16x256xbf16>, vector<256x256xbf16>, vector<16x256xf32> -> vector<16x256xf32>
    %c0_26 = arith.constant 0 : index
    %c0_27 = arith.constant 0 : index
    %68 = vector.load %arg6[%c0_26, %c0_27] : memref<16x256xf32, #tpu.memory_space<vmem>>, vector<16x256xf32>
    %69 = arith.addf %67, %68 : vector<16x256xf32>
    %70 = tpu.iota {dimensions = array<i32: 0>} : vector<16x1xi32>
    %c8_i32 = arith.constant 8 : i32
    %71 = vector.broadcast %c8_i32 : i32 to vector<16x1xi32>
    %72 = arith.cmpi sge, %70, %71 : vector<16x1xi32>
    %c10_i32 = arith.constant 10 : i32
    %73 = vector.broadcast %c10_i32 : i32 to vector<16x1xi32>
    %74 = arith.cmpi slt, %70, %73 : vector<16x1xi32>
    %75 = arith.andi %72, %74 : vector<16x1xi1>
    %cst_28 = arith.constant 5.000000e-01 : f32
    %76 = vector.broadcast %cst_28 : f32 to vector<16x256xf32>
    %77 = arith.cmpf ogt, %69, %76 : vector<16x256xf32>
    %cst_29 = arith.constant 1.000000e+00 : f32
    %cst_30 = arith.constant 0.000000e+00 : f32
    %78 = vector.broadcast %cst_29 : f32 to vector<16x256xf32>
    %79 = vector.broadcast %cst_30 : f32 to vector<16x256xf32>
    %80 = arith.select %77, %78, %79 : vector<16x256xi1>, vector<16x256xf32>
    %81 = vector.shape_cast %75 : vector<16x1xi1> to vector<16x1xi1>
    %82 = vector.broadcast %81 : vector<16x1xi1> to vector<16x256xi1>
    %83 = arith.select %82, %80, %69 : vector<16x256xi1>, vector<16x256xf32>
    %c0_31 = arith.constant 0 : index
    %c0_32 = arith.constant 0 : index
    %84 = vector.load %arg7[%c0_31, %c0_32] : memref<16x256xf32, #tpu.memory_space<vmem>>, vector<16x256xf32>
    tpu.vector_store %arg7[%c0_31, %c0_32], %83 {strides = array<i32>} : memref<16x256xf32, #tpu.memory_space<vmem>>, vector<16x256xf32>,
    return
  }
  func.func @transform_0(%arg0: i32, %arg1: memref<6xf32, #tpu.memory_space<smem>>) -> (i32, i32) {
    %c0_i32 = arith.constant 0 : i32
    %c0_i32_0 = arith.constant 0 : i32
    return %c0_i32, %arg0 : i32, i32
  }
  func.func @transform_1(%arg0: i32, %arg1: memref<6xf32, #tpu.memory_space<smem>>) -> (i32, i32) {
    %c0_i32 = arith.constant 0 : i32
    %c0_i32_0 = arith.constant 0 : i32
    %c0_i32_1 = arith.constant 0 : i32
    return %c0_i32, %c0_i32_0 : i32, i32
  }
  func.func @transform_2(%arg0: i32, %arg1: memref<6xf32, #tpu.memory_space<smem>>) -> (i32, i32) {
    %c0_i32 = arith.constant 0 : i32
    %c0_i32_0 = arith.constant 0 : i32
    %c0_i32_1 = arith.constant 0 : i32
    return %c0_i32, %c0_i32_0 : i32, i32
  }
  func.func @transform_3(%arg0: i32, %arg1: memref<6xf32, #tpu.memory_space<smem>>) -> (i32, i32) {
    %c0_i32 = arith.constant 0 : i32
    %c0_i32_0 = arith.constant 0 : i32
    %c0_i32_1 = arith.constant 0 : i32
    return %c0_i32, %c0_i32_0 : i32, i32
  }
  func.func @transform_4(%arg0: i32, %arg1: memref<6xf32, #tpu.memory_space<smem>>) -> (i32, i32) {
    %c0_i32 = arith.constant 0 : i32
    %c0_i32_0 = arith.constant 0 : i32
    return %c0_i32, %arg0 : i32, i32
  }
  func.func @transform_5(%arg0: i32, %arg1: memref<6xf32, #tpu.memory_space<smem>>) -> (i32, i32) {
    %c0_i32 = arith.constant 0 : i32
    %c0_i32_0 = arith.constant 0 : i32
    return %c0_i32, %arg0 : i32, i32
  }
}

</mosaic_0001>

<bundles_post_ra>
// kernel: tpu_custom_call.1
= control target key start
LH: loop header
LB: loop body
LE: loop exit
PB: predicated region body
PF: predicated region fallthrough
CT: control target
= control target key end

     0   :  { %s1735_s0 = inlined_call_operand.vmem [shape: f32[6], index: 0, kind: input, shape index: {}]   ;;  %s1736_s1 = inlined_call_operand.vmem [shape: f32[2,256], index: 1, kind: input, shape index: {}]   ;;  %s1737_s2 = inlined_call_operand.vmem [shape: f32[256,1], index: 2, kind: input, shape index: {}]   ;;  %s1738_s3 = inlined_call_operand.vmem [shape: f32[256,1], index: 3, kind: input, shape index: {}]   ;;  %s1739_s4 = inlined_call_operand.vmem [shape: bf16[16,256], index: 4, kind: input, shape index: {}]   ;;  %s1740_s5 = inlined_call_operand.vmem [shape: f32[16,256], index: 5, kind: input, shape index: {}]   ;;  %s1741_s6 = inlined_call_operand.hbm [shape: f32[16,256], index: 6, kind: output, shape index: {}]  }
   0x1   :  { %s11_s23 = sshll.u32 %s1735_s0, 4  ;;  %s12_s23 = int_to_ptr.vmem [resolvable:$true] %s11_s23 }
   0x2   :  { %s1202_s24 = scalar_lea.vmem %s12_s23, 16  ;;  %p1207_p1 = scmp.lt.s32.totalorder %s12_s23, %s12_s23 }
   0x3   :  { %p1203_p0 = scmp.ne.s32.totalorder %s12_s23, %s1202_s24  ;;  %p1208_p2 = scmp.lt.s32.totalorder %s1202_s24, %s1202_s24 }
   0x5   :  { %p1209_p3 = por %p1208_p2, %p1207_p1 }
   0x7   :  { %p1210_p4 = pnand %p1209_p3, %p1203_p0 }
   0x9   :  { %1213 = shalt.err (!%p1210_p4)  }
   0xa   :  { %s1238_s25 = smov [#allocation3]  }
   0xb   :  { %14 = dma.vmem_to_smem %s12_s23, 16, %s1238_s25, [#allocation2] }
   0xc   :  { %1234 = dma.done.wait [#allocation2], 16 }
   0xd   :  { %1235 = vsyncadd [#allocation2], 4294967280 }
   0xe   :  { %16 = sfence }
   0xf   :  { %v109_v0 = vld [vmem:[%s1738_s3 + $0x70] sm:$0xff]  ;;  %v1239_v2 = vmov 0   ;;  %v110_v3 = vld [vmem:[%s1738_s3 + $0x78] sm:$0xff]  ;;  %v76_v5 = vld [vmem:[%s1737_s2 + $0x68] sm:$0xff] }
  0x10   :  { %v77_v1 = vld [vmem:[%s1737_s2 + $0x70] sm:$0xff]  ;;  %1198 = vset.pattern.permute.xlu1 %v1239_v2  ;;  %1197 = vset.pattern.permute.xlu0 %v1239_v2  ;;  %v78_v4 = vld [vmem:[%s1737_s2 + $0x78] sm:$0xff]  ;;  %v75_v6 = vld [vmem:[%s1737_s2 + $0x60] sm:$0xff] }
  0x11   :  { %637 = vperm.xlu1 %1198, %v109_v0   ;;  %210 = vperm.xlu0 %1197, %v77_v1   ;;  %v108_v7 = vld [vmem:[%s1738_s3 + $0x68] sm:$0xff]  ;;  %v107_v8 = vld [vmem:[%s1738_s3 + $0x60] sm:$0xff]  ;;  %v74_v9 = vld [vmem:[%s1737_s2 + $0x58] sm:$0xff] }
  0x12   :  { %v73_v10 = vld [vmem:[%s1737_s2 + $0x50] sm:$0xff]  ;;  %v106_v11 = vld [vmem:[%s1738_s3 + $0x58] sm:$0xff] }
  0x13   :  { %v105_v12 = vld [vmem:[%s1738_s3 + $0x50] sm:$0xff] }
  0x15   :  { %642 = vperm.xlu1 %1198, %v110_v3   ;;  %215 = vperm.xlu0 %1197, %v78_v4  }
  0x19   :  { %205 = vperm.xlu1 %1198, %v76_v5   ;;  %200 = vperm.xlu0 %1197, %v75_v6  }
  0x1d   :  { %632 = vperm.xlu1 %1198, %v108_v7   ;;  %627 = vperm.xlu0 %1197, %v107_v8  }
  0x21   :  { %195 = vperm.xlu1 %1198, %v74_v9   ;;  %190 = vperm.xlu0 %1197, %v73_v10  }
  0x25   :  { %622 = vperm.xlu1 %1198, %v106_v11   ;;  %617 = vperm.xlu0 %1197, %v105_v12  }
  0x26   :  { %17 = vsyncpa [#allocation5], 0  ;;  %v72_v13 = vld [vmem:[%s1737_s2 + $0x48] sm:$0xff]  ;;  %v71_v14 = vld [vmem:[%s1737_s2 + $0x40] sm:$0xff]  ;;  %s28_s27 = sld [smem:[#allocation3]]  ;;  %s1240_s21 = smov [#allocation4]  }
  0x27   :  { %v104_v15 = vld [vmem:[%s1738_s3 + $0x48] sm:$0xff]  ;;  %v103_v16 = vld [vmem:[%s1738_s3 + $0x40] sm:$0xff]  ;;  %v70_v17 = vld [vmem:[%s1737_s2 + $0x38] sm:$0xff]  ;;  %s1181_s28 = sld [smem:[#allocation3 + $0x1]]  ;;  %s1170_s22 = sshll.u32 %s1240_s21, 4  ;;  %s1171_s22 = int_to_ptr.vmem [resolvable:$true] %s1170_s22 }
  0x28   :  { %v69_v18 = vld [vmem:[%s1737_s2 + $0x30] sm:$0xff]  ;;  %v102_v19 = vld [vmem:[%s1738_s3 + $0x38] sm:$0xff]  ;;  %v68_v21 = vld [vmem:[%s1737_s2 + $0x28] sm:$0xff]  ;;  %s1183_s29 = sld [smem:[#allocation3 + $0x3]]  ;;  %p1219_p6 = scmp.lt.s32.totalorder %s1171_s22, %s1171_s22 }
  0x29   :  { %185 = vperm.xlu1 %1198, %v72_v13   ;;  %180 = vperm.xlu0 %1197, %v71_v14   ;;  %v101_v20 = vld [vmem:[%s1738_s3 + $0x30] sm:$0xff]  ;;  %v67_v22 = vld [vmem:[%s1737_s2 + $0x20] sm:$0xff]  ;;  %v100_v23 = vld [vmem:[%s1738_s3 + $0x28] sm:$0xff]  ;;  %s1184_s9 = sld [smem:[#allocation3 + $0x4]] }
  0x2a   :  { %v99_v24 = vld [vmem:[%s1738_s3 + $0x20] sm:$0xff]  ;;  %v66_v25 = vld [vmem:[%s1737_s2 + $0x18] sm:$0xff]  ;;  %v65_v26 = vld [vmem:[%s1737_s2 + $0x10] sm:$0xff]  ;;  %s1182_s14 = sld [smem:[#allocation3 + $0x2]] }
  0x2b   :  { %v98_v27 = vld [vmem:[%s1738_s3 + $0x18] sm:$0xff]  ;;  %v97_v28 = vld [vmem:[%s1738_s3 + $0x10] sm:$0xff]  ;;  %v64_v29 = vld [vmem:[%s1737_s2 + $0x8] sm:$0xff]  ;;  %s1185_s23 = sld [smem:[#allocation3 + $0x5]] }
  0x2c   :  { %v63_v30 = vld [vmem:[%s1737_s2] sm:$0xff]  ;;  %v96_v31 = vld [vmem:[%s1738_s3 + $0x8] sm:$0xff]  ;;  %v94_v33 = vld [vmem:[%s1737_s2 + $0xf8] sm:$0xff]  ;;  %v37_v45 = vstv %s28_s27 }
  0x2d   :  { %612 = vperm.xlu1 %1198, %v104_v15   ;;  %607 = vperm.xlu0 %1197, %v103_v16   ;;  %v95_v32 = vld [vmem:[%s1738_s3] sm:$0xff]  ;;  %v93_v34 = vld [vmem:[%s1737_s2 + $0xf0] sm:$0xff]  ;;  %v126_v35 = vld [vmem:[%s1738_s3 + $0xf8] sm:$0xff]  ;;  %v39_v46 = vstv %s1181_s28  ;;  %v128_v15 = vlaneseq }
  0x2e   :  { %v125_v36 = vld [vmem:[%s1738_s3 + $0xf0] sm:$0xff]  ;;  %v92_v37 = vld [vmem:[%s1737_s2 + $0xe8] sm:$0xff]  ;;  %v91_v38 = vld [vmem:[%s1737_s2 + $0xe0] sm:$0xff]  ;;  %v44_v49 = vstv %s1183_s29 }
  0x2f   :  { %v124_v39 = vld [vmem:[%s1738_s3 + $0xe8] sm:$0xff]  ;;  %v123_v40 = vld [vmem:[%s1738_s3 + $0xe0] sm:$0xff]  ;;  %v90_v41 = vld [vmem:[%s1737_s2 + $0xd8] sm:$0xff]  ;;  %v46_v50 = vstv %s1184_s9 }
  0x30   :  { %v89_v42 = vld [vmem:[%s1737_s2 + $0xd0] sm:$0xff]  ;;  %v34_v43 = vld [vmem:[%s1736_s1] ss:$2 sm:$0x3]  ;;  %v122_v47 = vld [vmem:[%s1738_s3 + $0xd8] sm:$0xff]  ;;  %v42_v58 = vstv %s1182_s14 }
  0x31   :  { %175 = vperm.xlu1 %1198, %v70_v17   ;;  %170 = vperm.xlu0 %1197, %v69_v18   ;;  %v1186_v44 = vld [vmem:[%s1736_s1 + $0x1] ss:$2 sm:$0x3]  ;;  %v121_v48 = vld [vmem:[%s1738_s3 + $0xd0] sm:$0xff]  ;;  %v38_v51 = vmul.f32 %v37_v45, %v34_v43  ;;  %v45_v53 = vmul.f32 %v44_v49, %v34_v43  ;;  %v88_v55 = vld [vmem:[%s1737_s2 + $0xc8] sm:$0xff]  ;;  %v49_v62 = vstv %s1185_s23  ;;  %s1214_s23 = scalar_lea.vmem %s1171_s22, 512 }
  0x32   :  { %v40_v52 = vmul.f32 %v1186_v44, %v39_v46  ;;  %v47_v54 = vmul.f32 %v1186_v44, %v46_v50  ;;  %v87_v56 = vld [vmem:[%s1737_s2 + $0xc0] sm:$0xff]  ;;  %v120_v60 = vld [vmem:[%s1738_s3 + $0xc8] sm:$0xff]  ;;  %v86_v1 = vld [vmem:[%s1737_s2 + $0xb8] sm:$0xff]  ;;  %p1215_p5 = scmp.ne.s32.totalorder %s1171_s22, %s1214_s23  ;;  %p1220_p7 = scmp.lt.s32.totalorder %s1214_s23, %s1214_s23 }
  0x33   :  { %v119_v61 = vld [vmem:[%s1738_s3 + $0xc0] sm:$0xff]  ;;  %v85_v2 = vld [vmem:[%s1737_s2 + $0xb0] sm:$0xff]  ;;  %v118_v5 = vld [vmem:[%s1738_s3 + $0xb8] sm:$0xff] }
  0x34   :  { %v41_v57 = vadd.f32 %v40_v52, %v38_v51  ;;  %v48_v59 = vadd.f32 %v47_v54, %v45_v53  ;;  %v117_v6 = vld [vmem:[%s1738_s3 + $0xb0] sm:$0xff]  ;;  %v84_v9 = vld [vmem:[%s1737_s2 + $0xa8] sm:$0xff]  ;;  %v83_v10 = vld [vmem:[%s1737_s2 + $0xa0] sm:$0xff]  ;;  %p1221_p8 = por %p1220_p7, %p1219_p6 }
  0x35   :  { %602 = vperm.xlu1 %1198, %v102_v19   ;;  %597 = vperm.xlu0 %1197, %v101_v20   ;;  %v116_v13 = vld [vmem:[%s1738_s3 + $0xa8] sm:$0xff]  ;;  %v115_v14 = vld [vmem:[%s1738_s3 + $0xa0] sm:$0xff]  ;;  %v82_v18 = vld [vmem:[%s1737_s2 + $0x98] sm:$0xff]  ;;  %v1462_v20 = vshrl.u32 %v128_v15, 7 }
  0x36   :  { %v43_v63 = vadd.f32 %v42_v58, %v41_v57  ;;  %v50_v0 = vadd.f32 %v49_v62, %v48_v59  ;;  %v81_v19 = vld [vmem:[%s1737_s2 + $0x90] sm:$0xff]  ;;  %p1222_p9 = pnand %p1221_p8, %p1215_p5 }
  0x38   :  { %v51_v3 = vadd.f32 1.0, %v43_v63  ;;  %v57_v4 = vadd.f32 1.0, %v50_v0 }
  0x39   :  { %165 = vperm.xlu1 %1198, %v68_v21   ;;  %160 = vperm.xlu0 %1197, %v67_v22  }
  0x3a   :  { %v52_v7 = vmul.f32 16.0, %v51_v3  ;;  %v58_v8 = vmul.f32 16.0, %v57_v4 }
  0x3c   :  { %v1187_v11 = vadd.f32 -1.0, %v52_v7  ;;  %v1188_v12 = vadd.f32 -1.0, %v58_v8 }
  0x3d   :  { %592 = vperm.xlu1 %1198, %v100_v23   ;;  %587 = vperm.xlu0 %1197, %v99_v24   ;;  %v114_v23 = vld [vmem:[%s1738_s3 + $0x98] sm:$0xff]  ;;  %v113_v24 = vld [vmem:[%s1738_s3 + $0x90] sm:$0xff] }
  0x3e   :  { %v54_v16 = vmul.f32 0.5, %v1187_v11  ;;  %v60_v17 = vmul.f32 0.5, %v1188_v12 }
  0x40   :  { %v55_v21 = vmax.f32 %v54_v16, 0.0  ;;  %v61_v22 = vmax.f32 %v60_v17, 0.0 }
  0x41   :  { %155 = vperm.xlu1 %1198, %v66_v25   ;;  %150 = vperm.xlu0 %1197, %v65_v26   ;;  %v130_v25 = vsub.s32 0, %v1462_v20 }
  0x42   :  { %v56_v26 = vmin.f32 %v55_v21, 15.0 }
  0x45   :  { %582 = vperm.xlu1 %1198, %v98_v27   ;;  %577 = vperm.xlu0 %1197, %v97_v28   ;;  %v134_v27 = vsub.s32 1, %v1462_v20  ;;  %v62_v28 = vmin.f32 %v61_v22, 15.0 }
  0x49   :  { %145 = vperm.xlu1 %1198, %v64_v29   ;;  %140 = vperm.xlu0 %1197, %v63_v30   ;;  %v80_v29 = vld [vmem:[%s1737_s2 + $0x88] sm:$0xff]  ;;  %v79_v30 = vld [vmem:[%s1737_s2 + $0x80] sm:$0xff] }
  0x4d   :  { %572 = vperm.xlu1 %1198, %v96_v31   ;;  %567 = vperm.xlu0 %1197, %v95_v32   ;;  %v1478_v31 = vrot.slane %v56_v26, %v130_v25  ;;  %v1480_v32 = vrot.slane %v56_v26, %v134_v27 }
  0x51   :  { %295 = vperm.xlu1 %1198, %v94_v33   ;;  %290 = vperm.xlu0 %1197, %v93_v34   ;;  %v1482_v33 = vrot.slane %v62_v28, %v130_v25  ;;  %v1484_v34 = vrot.slane %v62_v28, %v134_v27 }
  0x55   :  { %722 = vperm.xlu1 %1198, %v126_v35   ;;  %717 = vperm.xlu0 %1197, %v125_v36   ;;  %v112_v35 = vld [vmem:[%s1738_s3 + $0x88] sm:$0xff]  ;;  %v111_v36 = vld [vmem:[%s1738_s3 + $0x80] sm:$0xff] }
  0x59   :  { %285 = vperm.xlu1 %1198, %v92_v37   ;;  %280 = vperm.xlu0 %1197, %v91_v38  }
  0x5d   :  { %712 = vperm.xlu1 %1198, %v124_v39   ;;  %707 = vperm.xlu0 %1197, %v123_v40  }
  0x61   :  { %275 = vperm.xlu1 %1198, %v90_v41   ;;  %270 = vperm.xlu0 %1197, %v89_v42  }
  0x65   :  { %702 = vperm.xlu1 %1198, %v122_v47   ;;  %697 = vperm.xlu0 %1197, %v121_v48  }
  0x69   :  { %265 = vperm.xlu1 %1198, %v88_v55   ;;  %260 = vperm.xlu0 %1197, %v87_v56  }
  0x6d   :  { %692 = vperm.xlu1 %1198, %v120_v60   ;;  %687 = vperm.xlu0 %1197, %v119_v61  }
  0x71   :  { %255 = vperm.xlu1 %1198, %v86_v1   ;;  %250 = vperm.xlu0 %1197, %v85_v2  }
  0x75   :  { %682 = vperm.xlu1 %1198, %v118_v5   ;;  %677 = vperm.xlu0 %1197, %v117_v6  }
  0x79   :  { %245 = vperm.xlu1 %1198, %v84_v9   ;;  %240 = vperm.xlu0 %1197, %v83_v10  }
  0x7d   :  { %672 = vperm.xlu1 %1198, %v116_v13   ;;  %667 = vperm.xlu0 %1197, %v115_v14  }
  0x81   :  { %235 = vperm.xlu1 %1198, %v82_v18   ;;  %230 = vperm.xlu0 %1197, %v81_v19  }
  0x85   :  { %662 = vperm.xlu1 %1198, %v114_v23   ;;  %657 = vperm.xlu0 %1197, %v113_v24  }
  0x89   :  { %225 = vperm.xlu1 %1198, %v80_v29   ;;  %220 = vperm.xlu0 %1197, %v79_v30  }
  0x8c   :  { %v638_v37 = vpop.permute.xlu1 %637  ;;  %v211_v38 = vpop.permute.xlu0 %210 }
  0x8d   :  { %v753_v39 = vsub.f32 %v1478_v31, %v638_v37  ;;  %v754_v40 = vsub.f32 %v1480_v32, %v638_v37  ;;  %v326_v41 = vsub.f32 %v1482_v33, %v211_v38  ;;  %v327_v42 = vsub.f32 %v1484_v34, %v211_v38  ;;  %652 = vperm.xlu1 %1198, %v112_v35  }
  0x8e   :  { %647 = vperm.xlu0 %1197, %v111_v36  }
  0x8f   :  { %v817_v43 = vand.u32 2147483647, %v753_v39  ;;  %v818_v44 = vand.u32 2147483647, %v754_v40  ;;  %v390_v45 = vand.u32 2147483647, %v326_v41 }
  0x90   :  { %v391_v46 = vand.u32 2147483647, %v327_v42  ;;  %v643_v47 = vpop.permute.xlu1 %642  ;;  %v216_v48 = vpop.permute.xlu0 %215 }
  0x91   :  { %v755_v49 = vsub.f32 %v1478_v31, %v643_v47  ;;  %v881_v50 = vsub.f32 1.0, %v817_v43  ;;  %v756_v51 = vsub.f32 %v1480_v32, %v643_v47  ;;  %v328_v52 = vsub.f32 %v1482_v33, %v216_v48 }
  0x92   :  { %v329_v53 = vsub.f32 %v1484_v34, %v216_v48  ;;  %v882_v54 = vsub.f32 1.0, %v818_v44  ;;  %v454_v56 = vsub.f32 1.0, %v390_v45  ;;  %v455_v57 = vsub.f32 1.0, %v391_v46 }
  0x93   :  { %v819_v55 = vand.u32 2147483647, %v755_v49  ;;  %v820_v58 = vand.u32 2147483647, %v756_v51  ;;  %v392_v59 = vand.u32 2147483647, %v328_v52 }
  0x94   :  { %v206_v60 = vpop.permute.xlu1 %205  ;;  %v201_v61 = vpop.permute.xlu0 %200  ;;  %v393_v63 = vand.u32 2147483647, %v329_v53  ;;  %v1502_v2 = vmax.f32 %v881_v50, 0.0  ;;  %v946_v6 = vmax.f32 %v882_v54, 0.0  ;;  %v518_v10 = vmax.f32 %v454_v56, 0.0 }
  0x95   :  { %v883_v62 = vsub.f32 1.0, %v819_v55  ;;  %v324_v0 = vsub.f32 %v1482_v33, %v206_v60  ;;  %v325_v1 = vsub.f32 %v1484_v34, %v206_v60  ;;  %v884_v3 = vsub.f32 1.0, %v820_v58 }
  0x96   :  { %v322_v4 = vsub.f32 %v1482_v33, %v201_v61  ;;  %v323_v5 = vsub.f32 %v1484_v34, %v201_v61  ;;  %v457_v7 = vsub.f32 1.0, %v393_v63  ;;  %v519_v11 = vmax.f32 %v455_v57, 0.0 }
  0x97   :  { %v388_v8 = vand.u32 2147483647, %v324_v0  ;;  %v389_v9 = vand.u32 2147483647, %v325_v1  ;;  %v947_v16 = vmax.f32 %v883_v62, 0.0  ;;  %v456_v17 = vsub.f32 1.0, %v392_v59 }
  0x98   :  { %v386_v12 = vand.u32 2147483647, %v322_v4  ;;  %v387_v13 = vand.u32 2147483647, %v323_v5  ;;  %v633_v14 = vpop.permute.xlu1 %632  ;;  %v628_v15 = vpop.permute.xlu0 %627  ;;  %v948_v21 = vmax.f32 %v884_v3, 0.0  ;;  %v521_v22 = vmax.f32 %v457_v7, 0.0 }
  0x99   :  { %v452_v18 = vsub.f32 1.0, %v388_v8  ;;  %v751_v19 = vsub.f32 %v1478_v31, %v633_v14  ;;  %v752_v23 = vsub.f32 %v1480_v32, %v633_v14  ;;  %v749_v24 = vsub.f32 %v1478_v31, %v628_v15 }
  0x9a   :  { %v453_v25 = vsub.f32 1.0, %v389_v9  ;;  %v450_v26 = vsub.f32 1.0, %v386_v12  ;;  %v750_v28 = vsub.f32 %v1480_v32, %v628_v15  ;;  %v451_v30 = vsub.f32 1.0, %v387_v13 }
  0x9b   :  { %v815_v27 = vand.u32 2147483647, %v751_v19  ;;  %v516_v29 = vmax.f32 %v452_v18, 0.0  ;;  %v816_v35 = vand.u32 2147483647, %v752_v23  ;;  %v520_v57 = vmax.f32 %v456_v17, 0.0 }
  0x9c   :  { %v813_v36 = vand.u32 2147483647, %v749_v24  ;;  %v196_v37 = vpop.permute.xlu1 %195  ;;  %v191_v38 = vpop.permute.xlu0 %190  ;;  %v814_v40 = vand.u32 2147483647, %v750_v28  ;;  %v517_v58 = vmax.f32 %v453_v25, 0.0  ;;  %v514_v59 = vmax.f32 %v450_v26, 0.0 }
  0x9d   :  { %v879_v39 = vsub.f32 1.0, %v815_v27  ;;  %v320_v41 = vsub.f32 %v1482_v33, %v196_v37  ;;  %v321_v42 = vsub.f32 %v1484_v34, %v196_v37  ;;  %v880_v43 = vsub.f32 1.0, %v816_v35 }
  0x9e   :  { %v877_v44 = vsub.f32 1.0, %v813_v36  ;;  %v318_v45 = vsub.f32 %v1482_v33, %v191_v38  ;;  %v319_v46 = vsub.f32 %v1484_v34, %v191_v38  ;;  %v878_v48 = vsub.f32 1.0, %v814_v40 }
  0x9f   :  { %v943_v47 = vmax.f32 %v879_v39, 0.0  ;;  %v384_v49 = vand.u32 2147483647, %v320_v41  ;;  %v385_v50 = vand.u32 2147483647, %v321_v42  ;;  %v944_v51 = vmax.f32 %v880_v43, 0.0 }
  0xa0   :  { %v941_v52 = vmax.f32 %v877_v44, 0.0  ;;  %v382_v53 = vand.u32 2147483647, %v318_v45  ;;  %v383_v54 = vand.u32 2147483647, %v319_v46  ;;  %v623_v55 = vpop.permute.xlu1 %622  ;;  %v618_v56 = vpop.permute.xlu0 %617  ;;  %v942_v60 = vmax.f32 %v878_v48, 0.0 }
  0xa1   :  { %v515_v61 = vmax.f32 %v451_v30, 0.0  ;;  %v1514_v62 = vmul.f32 %v943_v47, %v516_v29  ;;  %v448_v63 = vsub.f32 1.0, %v384_v49  ;;  %v449_v0 = vsub.f32 1.0, %v385_v50 }
  0xa2   :  { %v1008_v1 = vmul.f32 %v944_v51, %v517_v58  ;;  %v1516_v3 = vmul.f32 %v941_v52, %v514_v59  ;;  %v446_v4 = vsub.f32 1.0, %v382_v53  ;;  %v447_v5 = vsub.f32 1.0, %v383_v54 }
  0xa3   :  { %v1006_v7 = vmul.f32 %v942_v60, %v515_v61  ;;  %v1010_v8 = vmul.f32 %v946_v6, %v519_v11  ;;  %v1012_v9 = vmul.f32 %v948_v21, %v521_v22  ;;  %v1009_v12 = vmul.f32 %v1502_v2, %v518_v10 }
  0xa4   :  { %v186_v13 = vpop.permute.xlu1 %185  ;;  %v181_v14 = vpop.permute.xlu0 %180  ;;  %v1011_v15 = vmul.f32 %v947_v16, %v520_v57  ;;  %v747_v17 = vsub.f32 %v1478_v31, %v623_v55  ;;  %v748_v18 = vsub.f32 %v1480_v32, %v623_v55  ;;  %v745_v19 = vsub.f32 %v1478_v31, %v618_v56 }
  0xa5   :  { %v1060_v23 = vpack.c.bf16 %v1012_v9, %v1010_v8  ;;  %v746_v24 = vsub.f32 %v1480_v32, %v618_v56  ;;  %v316_v25 = vsub.f32 %v1482_v33, %v186_v13  ;;  %v317_v26 = vsub.f32 %v1484_v34, %v186_v13 }
  0xa6   :  { %v1059_v6 = vpack.c.bf16 %v1011_v15, %v1009_v12  ;;  %v811_v11 = vand.u32 2147483647, %v747_v17  ;;  %v812_v21 = vand.u32 2147483647, %v748_v18  ;;  %v809_v2 = vand.u32 2147483647, %v745_v19 }
  0xa7   :  { %1093 = vmatprep.subr.bf16.mxu0 %v1060_v23  ;;  %v810_v10 = vand.u32 2147483647, %v746_v24  ;;  %v380_v16 = vand.u32 2147483647, %v316_v25  ;;  %v381_v22 = vand.u32 2147483647, %v317_v26  ;;  %v314_v27 = vsub.f32 %v1482_v33, %v181_v14 }
  0xa8   :  { %v613_v28 = vpop.permute.xlu1 %612  ;;  %v608_v29 = vpop.permute.xlu0 %607  ;;  %1094 = vmatpush1.bf16.msra.mxu0 %v1059_v6  ;;  %v875_v30 = vsub.f32 1.0, %v811_v11  ;;  %v876_v35 = vsub.f32 1.0, %v812_v21  ;;  %v873_v36 = vsub.f32 1.0, %v809_v2  ;;  %v315_v37 = vsub.f32 %v1484_v34, %v181_v14 }
  0xa9   :  { %v874_v38 = vsub.f32 1.0, %v810_v10  ;;  %v444_v39 = vsub.f32 1.0, %v380_v16  ;;  %v445_v40 = vsub.f32 1.0, %v381_v22  ;;  %v378_v41 = vand.u32 2147483647, %v314_v27 }
  0xaa   :  { %v512_v42 = vmax.f32 %v448_v63, 0.0  ;;  %v513_v43 = vmax.f32 %v449_v0, 0.0  ;;  %v940_v44 = vmax.f32 %v876_v35, 0.0  ;;  %v379_v45 = vand.u32 2147483647, %v315_v37 }
  0xab   :  { %v510_v46 = vmax.f32 %v446_v4, 0.0  ;;  %v511_v47 = vmax.f32 %v447_v5, 0.0  ;;  %v939_v48 = vmax.f32 %v875_v30, 0.0  ;;  %v938_v49 = vmax.f32 %v874_v38, 0.0  ;;  %v1201_v4 = vld [vmem:[%s1739_s4 + $0x4] ss:$8 sps:$4 sm:$0xff]  }
  0xac   :  { %v176_v50 = vpop.permute.xlu1 %175  ;;  %v171_v51 = vpop.permute.xlu0 %170  ;;  %v937_v52 = vmax.f32 %v873_v36, 0.0  ;;  %v508_v53 = vmax.f32 %v444_v39, 0.0  ;;  %v509_v54 = vmax.f32 %v445_v40, 0.0  ;;  %v442_v55 = vsub.f32 1.0, %v378_v41  ;;  %1125 = vmatprep.mubr.bf16.mxu0 %v1201_v4 }
  0xad   :  { %v1004_v56 = vmul.f32 %v940_v44, %v513_v43  ;;  %v1002_v57 = vmul.f32 %v938_v49, %v511_v47  ;;  %v1058_v58 = vpack.c.bf16 %v1008_v1, %v1006_v7  ;;  %v1057_v59 = vpack.c.bf16 %v1514_v62, %v1516_v3 }
  0xae   :  { %v443_v60 = vsub.f32 1.0, %v379_v45  ;;  %v743_v61 = vsub.f32 %v1478_v31, %v613_v28  ;;  %v744_v63 = vsub.f32 %v1480_v32, %v613_v28  ;;  %v741_v0 = vsub.f32 %v1478_v31, %v608_v29 }
  0xaf   :  { %1095 = vmatprep.subr.bf16.mxu0 %v1058_v58  ;;  %v742_v5 = vsub.f32 %v1480_v32, %v608_v29  ;;  %v312_v8 = vsub.f32 %v1482_v33, %v176_v50  ;;  %v313_v1 = vsub.f32 %v1484_v34, %v176_v50  ;;  %v310_v62 = vsub.f32 %v1482_v33, %v171_v51 }
  0xb0   :  { %v603_v3 = vpop.permute.xlu1 %602  ;;  %v598_v7 = vpop.permute.xlu0 %597  ;;  %1096 = vmatpush1.bf16.msra.mxu0 %v1057_v59  ;;  %v807_v9 = vand.u32 2147483647, %v743_v61  ;;  %v808_v12 = vand.u32 2147483647, %v744_v63  ;;  %v805_v13 = vand.u32 2147483647, %v741_v0  ;;  %v311_v14 = vsub.f32 %v1484_v34, %v171_v51 }
  0xb1   :  { %v806_v15 = vand.u32 2147483647, %v742_v5  ;;  %v376_v17 = vand.u32 2147483647, %v312_v8  ;;  %v377_v18 = vand.u32 2147483647, %v313_v1  ;;  %v1056_v19 = vpack.c.bf16 %v1004_v56, %v1002_v57 }
  0xb2   :  { %v871_v23 = vsub.f32 1.0, %v807_v9  ;;  %v872_v24 = vsub.f32 1.0, %v808_v12  ;;  %v869_v25 = vsub.f32 1.0, %v805_v13  ;;  %v374_v26 = vand.u32 2147483647, %v310_v62 }
  0xb3   :  { %v1003_v6 = vmul.f32 %v939_v48, %v512_v42  ;;  %v1001_v11 = vmul.f32 %v937_v52, %v510_v46  ;;  %v870_v21 = vsub.f32 1.0, %v806_v15  ;;  %v375_v2 = vand.u32 2147483647, %v311_v14  ;;  %1097 = vmatprep.subr.bf16.mxu0 %v1056_v19 }
  0xb4   :  { %v166_v10 = vpop.permute.xlu1 %165  ;;  %v161_v16 = vpop.permute.xlu0 %160  ;;  %v506_v22 = vmax.f32 %v442_v55, 0.0  ;;  %v935_v27 = vmax.f32 %v871_v23, 0.0  ;;  %v936_v28 = vmax.f32 %v872_v24, 0.0  ;;  %v933_v29 = vmax.f32 %v869_v25, 0.0 }
  0xb5   :  { %v507_v30 = vmax.f32 %v443_v60, 0.0  ;;  %v934_v35 = vmax.f32 %v870_v21, 0.0  ;;  %v440_v36 = vsub.f32 1.0, %v376_v17  ;;  %v441_v37 = vsub.f32 1.0, %v377_v18 }
  0xb6   :  { %v999_v38 = vmul.f32 %v935_v27, %v508_v53  ;;  %v1000_v39 = vmul.f32 %v936_v28, %v509_v54  ;;  %v438_v40 = vsub.f32 1.0, %v374_v26  ;;  %v439_v41 = vsub.f32 1.0, %v375_v2 }
  0xb7   :  { %v997_v43 = vmul.f32 %v933_v29, %v506_v22  ;;  %v998_v42 = vmul.f32 %v934_v35, %v507_v30  ;;  %v1055_v44 = vpack.c.bf16 %v1003_v6, %v1001_v11  ;;  %v739_v45 = vsub.f32 %v1478_v31, %v603_v3 }
  0xb8   :  { %v593_v46 = vpop.permute.xlu1 %592  ;;  %v588_v47 = vpop.permute.xlu0 %587  ;;  %v740_v48 = vsub.f32 %v1480_v32, %v603_v3  ;;  %v737_v49 = vsub.f32 %v1478_v31, %v598_v7  ;;  %v738_v50 = vsub.f32 %v1480_v32, %v598_v7  ;;  %v308_v51 = vsub.f32 %v1482_v33, %v166_v10 }
  0xb9   :  { %1098 = vmatpush1.bf16.msra.mxu0 %v1055_v44  ;;  %v803_v52 = vand.u32 2147483647, %v739_v45  ;;  %v309_v53 = vsub.f32 %v1484_v34, %v166_v10  ;;  %v306_v54 = vsub.f32 %v1482_v33, %v161_v16  ;;  %v307_v55 = vsub.f32 %v1484_v34, %v161_v16 }
  0xba   :  { %v804_v56 = vand.u32 2147483647, %v740_v48  ;;  %v801_v57 = vand.u32 2147483647, %v737_v49  ;;  %v802_v58 = vand.u32 2147483647, %v738_v50  ;;  %v1054_v59 = vpack.c.bf16 %v1000_v39, %v998_v42 }
  0xbb   :  { %v867_v60 = vsub.f32 1.0, %v803_v52  ;;  %v372_v61 = vand.u32 2147483647, %v308_v51  ;;  %v373_v63 = vand.u32 2147483647, %v309_v53  ;;  %v1053_v0 = vpack.c.bf16 %v999_v38, %v997_v43 }
  0xbc   :  { %v156_v4 = vpop.permute.xlu1 %155  ;;  %v151_v5 = vpop.permute.xlu0 %150  ;;  %v868_v8 = vsub.f32 1.0, %v804_v56  ;;  %v865_v1 = vsub.f32 1.0, %v801_v57  ;;  %v866_v62 = vsub.f32 1.0, %v802_v58  ;;  %v370_v3 = vand.u32 2147483647, %v306_v54  ;;  %1099 = vmatprep.subr.bf16.mxu0 %v1054_v59 }
  0xbd   :  { %v504_v7 = vmax.f32 %v440_v36, 0.0  ;;  %v931_v9 = vmax.f32 %v867_v60, 0.0  ;;  %v436_v12 = vsub.f32 1.0, %v372_v61  ;;  %v371_v13 = vand.u32 2147483647, %v307_v55  ;;  %1100 = vmatpush1.bf16.msra.mxu0 %v1053_v0 }
  0xbe   :  { %v505_v14 = vmax.f32 %v441_v37, 0.0  ;;  %v503_v15 = vmax.f32 %v439_v41, 0.0  ;;  %v932_v17 = vmax.f32 %v868_v8, 0.0  ;;  %v930_v18 = vmax.f32 %v866_v62, 0.0 }
  0xbf   :  { %v502_v19 = vmax.f32 %v438_v40, 0.0  ;;  %v929_v23 = vmax.f32 %v865_v1, 0.0  ;;  %v437_v24 = vsub.f32 1.0, %v373_v63  ;;  %v434_v25 = vsub.f32 1.0, %v370_v3 }
  0xc0   :  { %v583_v26 = vpop.permute.xlu1 %582  ;;  %v1548_v6 = vpop.permute.xlu0 %577  ;;  %v995_v11 = vmul.f32 %v931_v9, %v504_v7  ;;  %v996_v21 = vmul.f32 %v932_v17, %v505_v14  ;;  %v994_v2 = vmul.f32 %v930_v18, %v503_v15  ;;  %v500_v10 = vmax.f32 %v436_v12, 0.0 }
  0xc1   :  { %v435_v16 = vsub.f32 1.0, %v371_v13  ;;  %v735_v22 = vsub.f32 %v1478_v31, %v593_v46  ;;  %v736_v27 = vsub.f32 %v1480_v32, %v593_v46  ;;  %v733_v28 = vsub.f32 %v1478_v31, %v588_v47 }
  0xc2   :  { %v734_v29 = vsub.f32 %v1480_v32, %v588_v47  ;;  %v304_v30 = vsub.f32 %v1482_v33, %v156_v4  ;;  %v305_v35 = vsub.f32 %v1484_v34, %v156_v4  ;;  %v302_v36 = vsub.f32 %v1482_v33, %v151_v5 }
  0xc3   :  { %v799_v37 = vand.u32 2147483647, %v735_v22  ;;  %v800_v38 = vand.u32 2147483647, %v736_v27  ;;  %v797_v39 = vand.u32 2147483647, %v733_v28  ;;  %v303_v40 = vsub.f32 %v1484_v34, %v151_v5 }
  0xc4   :  { %v146_v41 = vpop.permute.xlu1 %145  ;;  %v141_v43 = vpop.permute.xlu0 %140  ;;  %v798_v42 = vand.u32 2147483647, %v734_v29  ;;  %v368_v44 = vand.u32 2147483647, %v304_v30  ;;  %v369_v45 = vand.u32 2147483647, %v305_v35  ;;  %v1052_v46 = vpack.c.bf16 %v996_v21, %v994_v2 }
  0xc5   :  { %v863_v48 = vsub.f32 1.0, %v799_v37  ;;  %v864_v49 = vsub.f32 1.0, %v800_v38  ;;  %v861_v47 = vsub.f32 1.0, %v797_v39  ;;  %v366_v50 = vand.u32 2147483647, %v302_v36 }
  0xc6   :  { %v993_v51 = vmul.f32 %v929_v23, %v502_v19  ;;  %v501_v52 = vmax.f32 %v437_v24, 0.0  ;;  %v862_v53 = vsub.f32 1.0, %v798_v42  ;;  %v367_v54 = vand.u32 2147483647, %v303_v40  ;;  %1101 = vmatprep.subr.bf16.mxu0 %v1052_v46 }
  0xc7   :  { %v498_v55 = vmax.f32 %v434_v25, 0.0  ;;  %v927_v56 = vmax.f32 %v863_v48, 0.0  ;;  %v928_v57 = vmax.f32 %v864_v49, 0.0  ;;  %v925_v58 = vmax.f32 %v861_v47, 0.0 }
  0xc8   :  { %v1558_v59 = vpop.permute.xlu1 %572  ;;  %v1560_v60 = vpop.permute.xlu0 %567  ;;  %v499_v61 = vmax.f32 %v435_v16, 0.0  ;;  %v926_v63 = vmax.f32 %v862_v53, 0.0  ;;  %v432_v0 = vsub.f32 1.0, %v368_v44  ;;  %v433_v4 = vsub.f32 1.0, %v369_v45 }
  0xc9   :  { %v991_v5 = vmul.f32 %v927_v56, %v500_v10  ;;  %v992_v8 = vmul.f32 %v928_v57, %v501_v52  ;;  %v430_v1 = vsub.f32 1.0, %v366_v50  ;;  %v431_v62 = vsub.f32 1.0, %v367_v54 }
  0xca   :  { %v989_v3 = vmul.f32 %v925_v58, %v498_v55  ;;  %v990_v7 = vmul.f32 %v926_v63, %v499_v61  ;;  %v1051_v9 = vpack.c.bf16 %v995_v11, %v993_v51  ;;  %v731_v12 = vsub.f32 %v1478_v31, %v583_v26 }
  0xcb   :  { %v732_v13 = vsub.f32 %v1480_v32, %v583_v26  ;;  %v729_v14 = vsub.f32 %v1478_v31, %v1548_v6  ;;  %v730_v15 = vsub.f32 %v1480_v32, %v1548_v6  ;;  %v300_v17 = vsub.f32 %v1482_v33, %v146_v41 }
  0xcc   :  { %v296_v18 = vpop.permute.xlu1 %295  ;;  %v1569_v19 = vpop.permute.xlu0 %290  ;;  %1102 = vmatpush1.bf16.msra.mxu0 %v1051_v9  ;;  %v795_v23 = vand.u32 2147483647, %v731_v12  ;;  %v301_v24 = vsub.f32 %v1484_v34, %v146_v41  ;;  %v298_v25 = vsub.f32 %v1482_v33, %v141_v43  ;;  %v299_v11 = vsub.f32 %v1484_v34, %v141_v43 }
  0xcd   :  { %v796_v26 = vand.u32 2147483647, %v732_v13  ;;  %v793_v21 = vand.u32 2147483647, %v729_v14  ;;  %v794_v2 = vand.u32 2147483647, %v730_v15  ;;  %v1050_v10 = vpack.c.bf16 %v992_v8, %v990_v7 }
  0xce   :  { %v859_v16 = vsub.f32 1.0, %v795_v23  ;;  %v364_v22 = vand.u32 2147483647, %v300_v17  ;;  %v365_v6 = vand.u32 2147483647, %v301_v24  ;;  %v1049_v27 = vpack.c.bf16 %v991_v5, %v989_v3 }
  0xcf   :  { %v860_v28 = vsub.f32 1.0, %v796_v26  ;;  %v857_v29 = vsub.f32 1.0, %v793_v21  ;;  %v858_v30 = vsub.f32 1.0, %v794_v2  ;;  %v362_v35 = vand.u32 2147483647, %v298_v25  ;;  %1103 = vmatprep.subr.bf16.mxu0 %v1050_v10 }
  0xd0   :  { %v1574_v36 = vpop.permute.xlu1 %722  ;;  %v1576_v37 = vpop.permute.xlu0 %717  ;;  %v496_v38 = vmax.f32 %v432_v0, 0.0  ;;  %v923_v39 = vmax.f32 %v859_v16, 0.0  ;;  %v428_v40 = vsub.f32 1.0, %v364_v22  ;;  %v363_v41 = vand.u32 2147483647, %v299_v11  ;;  %1104 = vmatpush1.bf16.msra.mxu0 %v1049_v27 }
  0xd1   :  { %v497_v43 = vmax.f32 %v433_v4, 0.0  ;;  %v495_v42 = vmax.f32 %v431_v62, 0.0  ;;  %v924_v44 = vmax.f32 %v860_v28, 0.0  ;;  %v922_v45 = vmax.f32 %v858_v30, 0.0 }
  0xd2   :  { %v494_v46 = vmax.f32 %v430_v1, 0.0  ;;  %v921_v48 = vmax.f32 %v857_v29, 0.0  ;;  %v429_v49 = vsub.f32 1.0, %v365_v6  ;;  %v426_v47 = vsub.f32 1.0, %v362_v35 }
  0xd3   :  { %v987_v50 = vmul.f32 %v923_v39, %v496_v38  ;;  %v988_v51 = vmul.f32 %v924_v44, %v497_v43  ;;  %v986_v52 = vmul.f32 %v922_v45, %v495_v42  ;;  %v492_v53 = vmax.f32 %v428_v40, 0.0 }
  0xd4   :  { %v1578_v54 = vpop.permute.xlu1 %285  ;;  %v1580_v55 = vpop.permute.xlu0 %280  ;;  %v427_v56 = vsub.f32 1.0, %v363_v41  ;;  %v727_v57 = vsub.f32 %v1478_v31, %v1558_v59  ;;  %v728_v58 = vsub.f32 %v1480_v32, %v1558_v59  ;;  %v725_v61 = vsub.f32 %v1478_v31, %v1560_v60 }
  0xd5   :  { %v726_v63 = vsub.f32 %v1480_v32, %v1560_v60  ;;  %v360_v0 = vsub.f32 %v1482_v33, %v296_v18  ;;  %v361_v4 = vsub.f32 %v1484_v34, %v296_v18  ;;  %v358_v5 = vsub.f32 %v1482_v33, %v1569_v19 }
  0xd6   :  { %v791_v8 = vand.u32 2147483647, %v727_v57  ;;  %v792_v1 = vand.u32 2147483647, %v728_v58  ;;  %v789_v62 = vand.u32 2147483647, %v725_v61  ;;  %v359_v3 = vsub.f32 %v1484_v34, %v1569_v19 }
  0xd7   :  { %v790_v59 = vand.u32 2147483647, %v726_v63  ;;  %v424_v7 = vand.u32 2147483647, %v360_v0  ;;  %v425_v9 = vand.u32 2147483647, %v361_v4  ;;  %v1048_v12 = vpack.c.bf16 %v988_v51, %v986_v52 }
  0xd8   :  { %v1596_v13 = vpop.permute.xlu1 %712  ;;  %v1598_v60 = vpop.permute.xlu0 %707  ;;  %v855_v14 = vsub.f32 1.0, %v791_v8  ;;  %v856_v15 = vsub.f32 1.0, %v792_v1  ;;  %v853_v17 = vsub.f32 1.0, %v789_v62  ;;  %v422_v18 = vand.u32 2147483647, %v358_v5 }
  0xd9   :  { %v985_v23 = vmul.f32 %v921_v48, %v494_v46  ;;  %v493_v24 = vmax.f32 %v429_v49, 0.0  ;;  %v854_v25 = vsub.f32 1.0, %v790_v59  ;;  %v423_v11 = vand.u32 2147483647, %v359_v3  ;;  %1105 = vmatprep.subr.bf16.mxu0 %v1048_v12 }
  0xda   :  { %v490_v26 = vmax.f32 %v426_v47, 0.0  ;;  %v919_v21 = vmax.f32 %v855_v14, 0.0  ;;  %v920_v19 = vmax.f32 %v856_v15, 0.0  ;;  %v917_v2 = vmax.f32 %v853_v17, 0.0 }
  0xdb   :  { %v491_v10 = vmax.f32 %v427_v56, 0.0  ;;  %v918_v16 = vmax.f32 %v854_v25, 0.0  ;;  %v488_v22 = vsub.f32 1.0, %v424_v7  ;;  %v489_v6 = vsub.f32 1.0, %v425_v9 }
  0xdc   :  { %v1600_v27 = vpop.permute.xlu1 %275  ;;  %v1602_v28 = vpop.permute.xlu0 %270  ;;  %v983_v29 = vmul.f32 %v919_v21, %v492_v53  ;;  %v984_v30 = vmul.f32 %v920_v19, %v493_v24  ;;  %v486_v35 = vsub.f32 1.0, %v422_v18  ;;  %v487_v38 = vsub.f32 1.0, %v423_v11 }
  0xdd   :  { %v981_v39 = vmul.f32 %v917_v2, %v490_v26  ;;  %v982_v40 = vmul.f32 %v918_v16, %v491_v10  ;;  %v1047_v41 = vpack.c.bf16 %v987_v50, %v985_v23  ;;  %v787_v43 = vsub.f32 %v1478_v31, %v1574_v36 }
  0xde   :  { %v788_v42 = vsub.f32 %v1480_v32, %v1574_v36  ;;  %v785_v44 = vsub.f32 %v1478_v31, %v1576_v37  ;;  %v786_v45 = vsub.f32 %v1480_v32, %v1576_v37  ;;  %v356_v46 = vsub.f32 %v1482_v33, %v1578_v54 }
  0xdf   :  { %1106 = vmatpush1.bf16.msra.mxu0 %v1047_v41  ;;  %v851_v48 = vand.u32 2147483647, %v787_v43  ;;  %v357_v49 = vsub.f32 %v1484_v34, %v1578_v54  ;;  %v354_v47 = vsub.f32 %v1482_v33, %v1580_v55  ;;  %v355_v36 = vsub.f32 %v1484_v34, %v1580_v55 }
  0xe0   :  { %v1620_v50 = vpop.permute.xlu1 %702  ;;  %v1622_v51 = vpop.permute.xlu0 %697  ;;  %v852_v52 = vand.u32 2147483647, %v788_v42  ;;  %v849_v37 = vand.u32 2147483647, %v785_v44  ;;  %v850_v53 = vand.u32 2147483647, %v786_v45  ;;  %v1046_v56 = vpack.c.bf16 %v984_v30, %v982_v40 }
  0xe1   :  { %v915_v57 = vsub.f32 1.0, %v851_v48  ;;  %v420_v58 = vand.u32 2147483647, %v356_v46  ;;  %v421_v61 = vand.u32 2147483647, %v357_v49  ;;  %v1045_v63 = vpack.c.bf16 %v983_v29, %v981_v39 }
  0xe2   :  { %v916_v0 = vsub.f32 1.0, %v852_v52  ;;  %v913_v54 = vsub.f32 1.0, %v849_v37  ;;  %v914_v4 = vsub.f32 1.0, %v850_v53  ;;  %v418_v5 = vand.u32 2147483647, %v354_v47  ;;  %1107 = vmatprep.subr.bf16.mxu0 %v1046_v56 }
  0xe3   :  { %v552_v8 = vmax.f32 %v488_v22, 0.0  ;;  %v979_v1 = vmax.f32 %v915_v57, 0.0  ;;  %v484_v55 = vsub.f32 1.0, %v420_v58  ;;  %v419_v62 = vand.u32 2147483647, %v355_v36  ;;  %1108 = vmatpush1.bf16.msra.mxu0 %v1045_v63 }
  0xe4   :  { %v553_v3 = vmax.f32 %v489_v6, 0.0  ;;  %v551_v59 = vmax.f32 %v487_v38, 0.0  ;;  %v980_v7 = vmax.f32 %v916_v0, 0.0  ;;  %v978_v9 = vmax.f32 %v914_v4, 0.0  ;;  %v1624_v12 = vpop.permute.xlu1 %265  ;;  %v1626_v23 = vpop.permute.xlu0 %260 }
  0xe5   :  { %v550_v14 = vmax.f32 %v486_v35, 0.0  ;;  %v977_v15 = vmax.f32 %v913_v54, 0.0  ;;  %v485_v17 = vsub.f32 1.0, %v421_v61  ;;  %v482_v18 = vsub.f32 1.0, %v418_v5 }
  0xe6   :  { %v1043_v24 = vmul.f32 %v979_v1, %v552_v8  ;;  %v1044_v25 = vmul.f32 %v980_v7, %v553_v3  ;;  %v1042_v11 = vmul.f32 %v978_v9, %v551_v59  ;;  %v548_v26 = vmax.f32 %v484_v55, 0.0 }
  0xe7   :  { %v483_v21 = vsub.f32 1.0, %v419_v62  ;;  %v783_v19 = vsub.f32 %v1478_v31, %v1596_v13  ;;  %v784_v2 = vsub.f32 %v1480_v32, %v1596_v13  ;;  %v781_v10 = vsub.f32 %v1478_v31, %v1598_v60 }
  0xe8   :  { %v782_v16 = vsub.f32 %v1480_v32, %v1598_v60  ;;  %v352_v22 = vsub.f32 %v1482_v33, %v1600_v27  ;;  %v353_v6 = vsub.f32 %v1484_v34, %v1600_v27  ;;  %v350_v29 = vsub.f32 %v1482_v33, %v1602_v28  ;;  %v1644_v60 = vpop.permute.xlu1 %692  ;;  %v1646_v27 = vpop.permute.xlu0 %687 }
  0xe9   :  { %v847_v30 = vand.u32 2147483647, %v783_v19  ;;  %v848_v35 = vand.u32 2147483647, %v784_v2  ;;  %v845_v38 = vand.u32 2147483647, %v781_v10  ;;  %v351_v13 = vsub.f32 %v1484_v34, %v1602_v28 }
  0xea   :  { %v846_v39 = vand.u32 2147483647, %v782_v16  ;;  %v416_v40 = vand.u32 2147483647, %v352_v22  ;;  %v417_v41 = vand.u32 2147483647, %v353_v6  ;;  %v1076_v43 = vpack.c.bf16 %v1044_v25, %v1042_v11 }
  0xeb   :  { %v911_v42 = vsub.f32 1.0, %v847_v30  ;;  %v912_v44 = vsub.f32 1.0, %v848_v35  ;;  %v909_v45 = vsub.f32 1.0, %v845_v38  ;;  %v414_v46 = vand.u32 2147483647, %v350_v29 }
  0xec   :  { %v1041_v48 = vmul.f32 %v977_v15, %v550_v14  ;;  %v549_v49 = vmax.f32 %v485_v17, 0.0  ;;  %v910_v47 = vsub.f32 1.0, %v846_v39  ;;  %v415_v36 = vand.u32 2147483647, %v351_v13  ;;  %1109 = vmatprep.subr.bf16.mxu0 %v1076_v43  ;;  %v256_v62 = vpop.permute.xlu1 %255  ;;  %v1658_v14 = vpop.permute.xlu0 %250 }
  0xed   :  { %v546_v52 = vmax.f32 %v482_v18, 0.0  ;;  %v975_v37 = vmax.f32 %v911_v42, 0.0  ;;  %v976_v28 = vmax.f32 %v912_v44, 0.0  ;;  %v973_v53 = vmax.f32 %v909_v45, 0.0 }
  0xee   :  { %v547_v56 = vmax.f32 %v483_v21, 0.0  ;;  %v974_v57 = vmax.f32 %v910_v47, 0.0  ;;  %v480_v58 = vsub.f32 1.0, %v416_v40  ;;  %v481_v61 = vsub.f32 1.0, %v417_v41 }
  0xef   :  { %v1039_v63 = vmul.f32 %v975_v37, %v548_v26  ;;  %v1040_v0 = vmul.f32 %v976_v28, %v549_v49  ;;  %v478_v54 = vsub.f32 1.0, %v414_v46  ;;  %v479_v4 = vsub.f32 1.0, %v415_v36 }
  0xf0   :  { %v1037_v5 = vmul.f32 %v973_v53, %v546_v52  ;;  %v1038_v8 = vmul.f32 %v974_v57, %v547_v56  ;;  %v1075_v1 = vpack.c.bf16 %v1043_v24, %v1041_v48  ;;  %v779_v55 = vsub.f32 %v1478_v31, %v1620_v50  ;;  %v1666_v38 = vpop.permute.xlu1 %682  ;;  %v1668_v41 = vpop.permute.xlu0 %677 }
  0xf1   :  { %v780_v3 = vsub.f32 %v1480_v32, %v1620_v50  ;;  %v777_v59 = vsub.f32 %v1478_v31, %v1622_v51  ;;  %v778_v7 = vsub.f32 %v1480_v32, %v1622_v51  ;;  %v348_v9 = vsub.f32 %v1482_v33, %v1624_v12 }
  0xf2   :  { %1110 = vmatpush2.bf16.msra.mxu0 %v1075_v1  ;;  %v843_v15 = vand.u32 2147483647, %v779_v55  ;;  %v349_v17 = vsub.f32 %v1484_v34, %v1624_v12  ;;  %v346_v18 = vsub.f32 %v1482_v33, %v1626_v23  ;;  %v347_v50 = vsub.f32 %v1484_v34, %v1626_v23 }
  0xf3   :  { %v844_v24 = vand.u32 2147483647, %v780_v3  ;;  %v841_v25 = vand.u32 2147483647, %v777_v59  ;;  %v842_v11 = vand.u32 2147483647, %v778_v7  ;;  %v1074_v51 = vpack.c.bf16 %v1040_v0, %v1038_v8 }
  0xf4   :  { %v907_v26 = vsub.f32 1.0, %v843_v15  ;;  %v412_v21 = vand.u32 2147483647, %v348_v9  ;;  %v413_v19 = vand.u32 2147483647, %v349_v17  ;;  %v1073_v2 = vpack.c.bf16 %v1039_v63, %v1037_v5  ;;  %v241_v55 = vpop.permute.xlu0 %240 }
  0xf5   :  { %v908_v10 = vsub.f32 1.0, %v844_v24  ;;  %v905_v16 = vsub.f32 1.0, %v841_v25  ;;  %v906_v22 = vsub.f32 1.0, %v842_v11  ;;  %v410_v6 = vand.u32 2147483647, %v346_v18  ;;  %1111 = vmatprep.subr.bf16.mxu0 %v1074_v51 }
  0xf6   :  { %v544_v12 = vmax.f32 %v480_v58, 0.0  ;;  %v971_v29 = vmax.f32 %v907_v26, 0.0  ;;  %v476_v30 = vsub.f32 1.0, %v412_v21  ;;  %v411_v35 = vand.u32 2147483647, %v347_v50  ;;  %1112 = vmatpush2.bf16.msra.mxu0 %v1073_v2 }
  0xf7   :  { %v545_v23 = vmax.f32 %v481_v61, 0.0  ;;  %v543_v13 = vmax.f32 %v479_v4, 0.0  ;;  %v972_v39 = vmax.f32 %v908_v10, 0.0  ;;  %v970_v40 = vmax.f32 %v906_v22, 0.0 }
  0xf8   :  { %v542_v43 = vmax.f32 %v478_v54, 0.0  ;;  %v969_v42 = vmax.f32 %v905_v16, 0.0  ;;  %v477_v44 = vsub.f32 1.0, %v413_v19  ;;  %v474_v45 = vsub.f32 1.0, %v410_v6 }
  0xf9   :  { %v1035_v46 = vmul.f32 %v971_v29, %v544_v12  ;;  %v1036_v48 = vmul.f32 %v972_v39, %v545_v23  ;;  %v1034_v49 = vmul.f32 %v970_v40, %v543_v13  ;;  %v540_v47 = vmax.f32 %v476_v30, 0.0  ;;  %v668_v30 = vpop.permute.xlu0 %667 }
  0xfa   :  { %v475_v36 = vsub.f32 1.0, %v411_v35  ;;  %v775_v52 = vsub.f32 %v1478_v31, %v1644_v60  ;;  %v776_v37 = vsub.f32 %v1480_v32, %v1644_v60  ;;  %v773_v28 = vsub.f32 %v1478_v31, %v1646_v27  ;;  %v246_v60 = vpop.permute.xlu1 %245 }
  0xfb   :  { %v774_v53 = vsub.f32 %v1480_v32, %v1646_v27  ;;  %v344_v56 = vsub.f32 %v1482_v33, %v256_v62  ;;  %v345_v57 = vsub.f32 %v1484_v34, %v256_v62  ;;  %v342_v58 = vsub.f32 %v1482_v33, %v1658_v14 }
  0xfc   :  { %v839_v61 = vand.u32 2147483647, %v775_v52  ;;  %v840_v63 = vand.u32 2147483647, %v776_v37  ;;  %v837_v0 = vand.u32 2147483647, %v773_v28  ;;  %v343_v54 = vsub.f32 %v1484_v34, %v1658_v14 }
  0xfd   :  { %v838_v4 = vand.u32 2147483647, %v774_v53  ;;  %v408_v5 = vand.u32 2147483647, %v344_v56  ;;  %v409_v8 = vand.u32 2147483647, %v345_v57  ;;  %v1072_v1 = vpack.c.bf16 %v1036_v48, %v1034_v49 }
  0xfe   :  { %v903_v27 = vsub.f32 1.0, %v839_v61  ;;  %v904_v3 = vsub.f32 1.0, %v840_v63  ;;  %v901_v59 = vsub.f32 1.0, %v837_v0  ;;  %v406_v7 = vand.u32 2147483647, %v342_v58  ;;  %v673_v16 = vpop.permute.xlu1 %672  ;;  %v231_v0 = vpop.permute.xlu0 %230 }
  0xff   :  { %v1033_v62 = vmul.f32 %v969_v42, %v542_v43  ;;  %v541_v9 = vmax.f32 %v477_v44, 0.0  ;;  %v902_v15 = vsub.f32 1.0, %v838_v4  ;;  %v407_v17 = vand.u32 2147483647, %v343_v54  ;;  %1113 = vmatprep.subr.bf16.mxu0 %v1072_v1 }
 0x100   :  { %v538_v18 = vmax.f32 %v474_v45, 0.0  ;;  %v967_v50 = vmax.f32 %v903_v27, 0.0  ;;  %v968_v24 = vmax.f32 %v904_v3, 0.0  ;;  %v965_v25 = vmax.f32 %v901_v59, 0.0 }
 0x101   :  { %v539_v14 = vmax.f32 %v475_v36, 0.0  ;;  %v966_v11 = vmax.f32 %v902_v15, 0.0  ;;  %v472_v51 = vsub.f32 1.0, %v408_v5  ;;  %v473_v26 = vsub.f32 1.0, %v409_v8 }
 0x102   :  { %v1031_v21 = vmul.f32 %v967_v50, %v540_v47  ;;  %v1032_v19 = vmul.f32 %v968_v24, %v541_v9  ;;  %v470_v2 = vsub.f32 1.0, %v406_v7  ;;  %v471_v10 = vsub.f32 1.0, %v407_v17  ;;  %v236_v56 = vpop.permute.xlu1 %235 }
 0x103   :  { %v1029_v22 = vmul.f32 %v965_v25, %v538_v18  ;;  %v1030_v6 = vmul.f32 %v966_v11, %v539_v14  ;;  %v1071_v12 = vpack.c.bf16 %v1035_v46, %v1033_v62  ;;  %v771_v29 = vsub.f32 %v1478_v31, %v1666_v38 }
 0x104   :  { %v772_v35 = vsub.f32 %v1480_v32, %v1666_v38  ;;  %v769_v23 = vsub.f32 %v1478_v31, %v1668_v41  ;;  %v770_v13 = vsub.f32 %v1480_v32, %v1668_v41  ;;  %v340_v39 = vsub.f32 %v1482_v33, %v246_v60 }
 0x105   :  { %1114 = vmatpush2.bf16.msra.mxu0 %v1071_v12  ;;  %v835_v40 = vand.u32 2147483647, %v771_v29  ;;  %v341_v43 = vsub.f32 %v1484_v34, %v246_v60  ;;  %v338_v42 = vsub.f32 %v1482_v33, %v241_v55  ;;  %v339_v44 = vsub.f32 %v1484_v34, %v241_v55 }
 0x106   :  { %v836_v45 = vand.u32 2147483647, %v772_v35  ;;  %v833_v46 = vand.u32 2147483647, %v769_v23  ;;  %v834_v48 = vand.u32 2147483647, %v770_v13  ;;  %v1070_v38 = vpack.c.bf16 %v1032_v19, %v1030_v6  ;;  %v663_v11 = vpop.permute.xlu1 %662 }
 0x107   :  { %v899_v49 = vsub.f32 1.0, %v835_v40  ;;  %v404_v47 = vand.u32 2147483647, %v340_v39  ;;  %v405_v36 = vand.u32 2147483647, %v341_v43  ;;  %v1069_v52 = vpack.c.bf16 %v1031_v21, %v1029_v22 }
 0x108   :  { %v900_v37 = vsub.f32 1.0, %v836_v45  ;;  %v897_v41 = vsub.f32 1.0, %v833_v46  ;;  %v898_v28 = vsub.f32 1.0, %v834_v48  ;;  %v402_v53 = vand.u32 2147483647, %v338_v42  ;;  %1115 = vmatprep.subr.bf16.mxu0 %v1070_v38 }
 0x109   :  { %v536_v57 = vmax.f32 %v472_v51, 0.0  ;;  %v963_v58 = vmax.f32 %v899_v49, 0.0  ;;  %v468_v61 = vsub.f32 1.0, %v404_v47  ;;  %v403_v63 = vand.u32 2147483647, %v339_v44  ;;  %1116 = vmatpush2.bf16.msra.mxu0 %v1069_v52 }
 0x10a   :  { %v537_v54 = vmax.f32 %v473_v26, 0.0  ;;  %v535_v60 = vmax.f32 %v471_v10, 0.0  ;;  %v964_v4 = vmax.f32 %v900_v37, 0.0  ;;  %v962_v5 = vmax.f32 %v898_v28, 0.0  ;;  %v226_v47 = vpop.permute.xlu1 %225 }
 0x10b   :  { %v534_v8 = vmax.f32 %v470_v2, 0.0  ;;  %v961_v1 = vmax.f32 %v897_v41, 0.0  ;;  %v469_v55 = vsub.f32 1.0, %v405_v36  ;;  %v466_v27 = vsub.f32 1.0, %v402_v53  ;;  %v658_v2 = vpop.permute.xlu0 %657 }
 0x10c   :  { %v1027_v3 = vmul.f32 %v963_v58, %v536_v57  ;;  %v1028_v59 = vmul.f32 %v964_v4, %v537_v54  ;;  %v1026_v7 = vmul.f32 %v962_v5, %v535_v60  ;;  %v532_v62 = vmax.f32 %v468_v61, 0.0 }
 0x10d   :  { %v467_v9 = vsub.f32 1.0, %v403_v63  ;;  %v767_v15 = vsub.f32 %v1478_v31, %v673_v16  ;;  %v768_v17 = vsub.f32 %v1480_v32, %v673_v16  ;;  %v765_v18 = vsub.f32 %v1478_v31, %v668_v30 }
 0x10e   :  { %v766_v50 = vsub.f32 %v1480_v32, %v668_v30  ;;  %v336_v24 = vsub.f32 %v1482_v33, %v236_v56  ;;  %v337_v25 = vsub.f32 %v1484_v34, %v236_v56  ;;  %v334_v14 = vsub.f32 %v1482_v33, %v231_v0 }
 0x10f   :  { %v831_v51 = vand.u32 2147483647, %v767_v15  ;;  %v832_v26 = vand.u32 2147483647, %v768_v17  ;;  %v829_v21 = vand.u32 2147483647, %v765_v18  ;;  %v335_v19 = vsub.f32 %v1484_v34, %v231_v0  ;;  %v221_v28 = vpop.permute.xlu0 %220 }
 0x110   :  { %v830_v10 = vand.u32 2147483647, %v766_v50  ;;  %v400_v22 = vand.u32 2147483647, %v336_v24  ;;  %v401_v16 = vand.u32 2147483647, %v337_v25  ;;  %v1068_v6 = vpack.c.bf16 %v1028_v59, %v1026_v7 }
 0x111   :  { %v895_v12 = vsub.f32 1.0, %v831_v51  ;;  %v896_v29 = vsub.f32 1.0, %v832_v26  ;;  %v893_v30 = vsub.f32 1.0, %v829_v21  ;;  %v398_v35 = vand.u32 2147483647, %v334_v14 }
 0x112   :  { %v1025_v23 = vmul.f32 %v961_v1, %v534_v8  ;;  %v533_v13 = vmax.f32 %v469_v55, 0.0  ;;  %v894_v39 = vsub.f32 1.0, %v830_v10  ;;  %v464_v40 = vsub.f32 1.0, %v400_v22  ;;  %1117 = vmatprep.subr.bf16.mxu0 %v1068_v6 }
 0x113   :  { %v530_v43 = vmax.f32 %v466_v27, 0.0  ;;  %v959_v42 = vmax.f32 %v895_v12, 0.0  ;;  %v960_v44 = vmax.f32 %v896_v29, 0.0  ;;  %v957_v45 = vmax.f32 %v893_v30, 0.0 }
 0x114   :  { %v531_v46 = vmax.f32 %v467_v9, 0.0  ;;  %v958_v48 = vmax.f32 %v894_v39, 0.0  ;;  %v465_v38 = vsub.f32 1.0, %v401_v16  ;;  %v399_v49 = vand.u32 2147483647, %v335_v19  ;;  %v653_v19 = vpop.permute.xlu1 %652 }
 0x115   :  { %v1023_v36 = vmul.f32 %v959_v42, %v532_v62  ;;  %v1024_v52 = vmul.f32 %v960_v44, %v533_v13  ;;  %v528_v37 = vmax.f32 %v464_v40, 0.0  ;;  %v462_v41 = vsub.f32 1.0, %v398_v35 }
 0x116   :  { %v1021_v53 = vmul.f32 %v957_v45, %v530_v43  ;;  %v1022_v56 = vmul.f32 %v958_v48, %v531_v46  ;;  %v1067_v57 = vpack.c.bf16 %v1027_v3, %v1025_v23  ;;  %v763_v58 = vsub.f32 %v1478_v31, %v663_v11 }
 0x117   :  { %v764_v61 = vsub.f32 %v1480_v32, %v663_v11  ;;  %v761_v63 = vsub.f32 %v1478_v31, %v658_v2  ;;  %v762_v0 = vsub.f32 %v1480_v32, %v658_v2  ;;  %v332_v54 = vsub.f32 %v1482_v33, %v226_v47  ;;  %v648_v2 = vpop.permute.xlu0 %647 }
 0x118   :  { %v463_v60 = vsub.f32 1.0, %v399_v49  ;;  %1118 = vmatpush2.bf16.msra.mxu0 %v1067_v57  ;;  %v827_v4 = vand.u32 2147483647, %v763_v58  ;;  %v333_v5 = vsub.f32 %v1484_v34, %v226_v47  ;;  %v330_v8 = vsub.f32 %v1482_v33, %v221_v28 }
 0x119   :  { %v828_v1 = vand.u32 2147483647, %v764_v61  ;;  %v825_v55 = vand.u32 2147483647, %v761_v63  ;;  %v826_v27 = vand.u32 2147483647, %v762_v0  ;;  %v1066_v3 = vpack.c.bf16 %v1024_v52, %v1022_v56 }
 0x11a   :  { %v529_v59 = vmax.f32 %v465_v38, 0.0  ;;  %v891_v7 = vsub.f32 1.0, %v827_v4  ;;  %v396_v62 = vand.u32 2147483647, %v332_v54  ;;  %v1065_v9 = vpack.c.bf16 %v1023_v36, %v1021_v53  ;;  %v1079_v4 = vld [vmem:[%s1740_s5] sm:$0xff] }
 0x11b   :  { %v892_v15 = vsub.f32 1.0, %v828_v1  ;;  %v889_v17 = vsub.f32 1.0, %v825_v55  ;;  %v890_v18 = vsub.f32 1.0, %v826_v27  ;;  %v331_v50 = vsub.f32 %v1484_v34, %v221_v28  ;;  %1119 = vmatprep.subr.bf16.mxu0 %v1066_v3  ;;  %v1081_v27 = vld [vmem:[%s1740_s5 + $0x10] sm:$0xff] }
 0x11c   :  { %v526_v24 = vmax.f32 %v462_v41, 0.0  ;;  %v527_v25 = vmax.f32 %v463_v60, 0.0  ;;  %v955_v14 = vmax.f32 %v891_v7, 0.0  ;;  %v397_v11 = vand.u32 2147483647, %v333_v5  ;;  %1120 = vmatpush2.bf16.msra.mxu0 %v1065_v9 }
 0x11d   :  { %v956_v33 = vmax.f32 %v892_v15, 0.0  ;;  %v953_v51 = vmax.f32 %v889_v17, 0.0  ;;  %v954_v26 = vmax.f32 %v890_v18, 0.0  ;;  %v394_v21 = vand.u32 2147483647, %v330_v8  ;;  %v1080_v8 = vld [vmem:[%s1740_s5 + $0x8] sm:$0xff] }
 0x11e   :  { %v1019_v10 = vmul.f32 %v955_v14, %v528_v37  ;;  %v460_v22 = vsub.f32 1.0, %v396_v62  ;;  %v395_v29 = vand.u32 2147483647, %v331_v50  ;;  %v461_v30 = vsub.f32 1.0, %v397_v11  ;;  %v1199_v60 = vld [vmem:[%s1739_s4] ss:$8 sps:$4 sm:$0xff]  }
 0x11f   :  { %v1020_v16 = vmul.f32 %v956_v33, %v529_v59  ;;  %v1017_v6 = vmul.f32 %v953_v51, %v526_v24  ;;  %v1018_v12 = vmul.f32 %v954_v26, %v527_v25  ;;  %v759_v34 = vsub.f32 %v1478_v31, %v653_v19  ;;  %v1082_v62 = vld [vmem:[%s1740_s5 + $0x18] sm:$0xff] }
 0x120   :  { %v760_v35 = vsub.f32 %v1480_v32, %v653_v19  ;;  %v757_v23 = vsub.f32 %v1478_v31, %v648_v2  ;;  %v458_v13 = vsub.f32 1.0, %v394_v21  ;;  %v758_v39 = vsub.f32 %v1480_v32, %v648_v2 }
 0x121   :  { %v1064_v40 = vpack.c.bf16 %v1020_v16, %v1018_v12  ;;  %v1063_v43 = vpack.c.bf16 %v1019_v10, %v1017_v6  ;;  %v823_v42 = vand.u32 2147483647, %v759_v34  ;;  %v459_v46 = vsub.f32 1.0, %v395_v29 }
 0x122   :  { %v824_v44 = vand.u32 2147483647, %v760_v35  ;;  %v821_v45 = vand.u32 2147483647, %v757_v23  ;;  %v822_v48 = vand.u32 2147483647, %v758_v39 }
 0x123   :  { %1121 = vmatprep.subr.bf16.mxu0 %v1064_v40  ;;  %v887_v38 = vsub.f32 1.0, %v823_v42  ;;  %v524_v36 = vmax.f32 %v460_v22, 0.0  ;;  %v525_v52 = vmax.f32 %v461_v30, 0.0  ;;  %v522_v41 = vmax.f32 %v458_v13, 0.0 }
 0x124   :  { %v888_v49 = vsub.f32 1.0, %v824_v44  ;;  %v885_v47 = vsub.f32 1.0, %v821_v45  ;;  %1122 = vmatpush2.bf16.msra.mxu0 %v1063_v43  ;;  %v886_v37 = vsub.f32 1.0, %v822_v48  ;;  %v523_v32 = vmax.f32 %v459_v46, 0.0 }
 0x125   :  { %v951_v31 = vmax.f32 %v887_v38, 0.0  ;;  %v1138_v3 = vadd.s32 8, %v1462_v20  ;;  %v1241_v18 = vmov 0.0  }
 0x126   :  { %v952_v28 = vmax.f32 %v888_v49, 0.0  ;;  %v949_v53 = vmax.f32 %v885_v47, 0.0  ;;  %v950_v56 = vmax.f32 %v886_v37, 0.0 }
 0x127   :  { %v1015_v57 = vmul.f32 %v951_v31, %v524_v36  ;;  %vm1142_vm0 = vcmp.lt.s32.totalorder %v1138_v3, 10 }
 0x128   :  { %v1016_v58 = vmul.f32 %v952_v28, %v525_v52  ;;  %v1013_v61 = vmul.f32 %v949_v53, %v522_v41  ;;  %v1014_v63 = vmul.f32 %v950_v56, %v523_v32 }
 0x12a   :  { %v1061_v0 = vpack.c.bf16 %v1015_v57, %v1013_v61  ;;  %v1062_v54 = vpack.c.bf16 %v1016_v58, %v1014_v63 }
 0x12c   :  { %1123 = vmatprep.subr.bf16.mxu0 %v1062_v54 }
 0x12d   :  { %1124 = vmatpush2.bf16.msra.mxu0 %v1061_v0 }
 0x130   :  { %1126 = vmatmul.mubr.bf16.vlgmr.msra.gmra.mxu0 %v1199_v60 }
 0x1f0   :  { %v1127_v5 = vpop.f32.mrf.mxu0 }
 0x1f1   :  { %v1128_v1 = vadd.f32 %v1127_v5, %v1079_v4 }
 0x1f2   :  { %v1129_v55 = vpop.f32.mrf.mxu0 }
 0x1f3   :  { %1161 = vst [vmem:[#allocation4] sm:$0xff] %v1128_v1  ;;  %v1130_v59 = vadd.f32 %v1129_v55, %v1080_v8 }
 0x1f4   :  { %v1131_v7 = vpop.f32.mrf.mxu0 }
 0x1f5   :  { %1162 = vst [vmem:[#allocation4 + $0x8] sm:$0xff] %v1130_v59  ;;  %v1132_v9 = vadd.f32 %v1131_v7, %v1081_v27 }
 0x1f6   :  { %v1133_v15 = vpop.f32.mrf.mxu0 }
 0x1f7   :  { %vm1147_vm1 = vcmp.gt.f32.partialorder %v1132_v9, 0.5  ;;  %v1134_v17 = vadd.f32 %v1133_v15, %v1082_v62 }
 0x1f8   :  { %v1151_v50 = vsel %vm1147_vm1, 1.0, %v1241_v18 }
 0x1f9   :  { %v1159_v24 = vsel %vm1142_vm0, %v1151_v50, %v1132_v9  ;;  %vm1148_vm2 = vcmp.gt.f32.partialorder %v1134_v17, 0.5 }
 0x1fa   :  { %1163 = vst [vmem:[#allocation4 + $0x10] sm:$0xff] %v1159_v24  ;;  %v1152_v20 = vsel %vm1148_vm2, 1.0, %v1241_v18 }
 0x1fb   :  { %v1160_v25 = vsel %vm1142_vm0, %v1152_v20, %v1134_v17 }
 0x1fc   :  { %1164 = vst [vmem:[#allocation4 + $0x18] sm:$0xff] %v1160_v25 }
 0x1fd   :  { %1225 = shalt.err (!%p1222_p9)
}
 0x1fe   :  { %s1242_s5 = smov 256   ;;  %s1243_s1 = smov 16  }
 0x1ff   :  { %1176 = dma.vmem_to_hbm [thread:$0]  %s1171_s22, 512, %s1741_s6, [#allocation5], %s1242_s5, %s1242_s5, %s1243_s1  }
 0x200   :  { %1236 = dma.done.wait [#allocation5], 512  }
 0x201   :  { %1237 = vsyncadd [#allocation5], 4294966784 }
 0x202   :  { %1180 = vsyncpa [#allocation5], 1 }

</bundles_post_ra>
